<compile_context>
chip_gen: v7x
topology: tpu7x:2x2x1
jax: 0.10.0
libtpu: 0.0.40
codegen_flags: <defaults>
</compile_context>

<pallas_src>
import jax
import jax.numpy as jnp
from jax.experimental import pallas as pl
from jax.experimental.pallas import tpu as pltpu

IN_DIM = 28 * 28   # 784 — full last dim of x; no lane padding needed
H1 = 128
H2 = 64
OUT = 10

H2_PAD = 128       # weight-side-only lane padding (exact)
OUT_PAD = 128

# 1024-row x tile: x 2*1024*784*4 B (double-buffered) + out 2*1024*128*4 B
# + resident weights (~0.5 MiB, double-buffered ~1 MiB) ~= 8-9 MiB total VMEM,
# under v5e's 16 MiB scoped default and v6e/v7x's 32 MiB.
MAX_BATCH_TILE = 1024

# Set True on v5e if profiling shows the f32 multi-pass MXU path binding.
# Keeps f32 accumulation but truncates x/W1 mantissas (not bit-exact).
USE_BF16_MATMUL = False


def _round_up(n, m):
    return (n + m - 1) // m * m


def _pick_tile(b8):
    """Rows of x per grid step (static, b8 is a Python int, multiple of 8)."""
    if b8 <= 8:
        return 8
    if b8 <= 2 * MAX_BATCH_TILE:
        # Guarantee >= 2 grid steps so both v7x TensorCores get work.
        half = -(-b8 // 2)
        return min(MAX_BATCH_TILE, _round_up(half, 8))
    return MAX_BATCH_TILE


def _mlp_kernel(x_ref, w1_ref, b1_ref, w2_ref, b2_ref, w3_ref, b3_ref, o_ref):
    # Fully fused 3-layer MLP on one batch tile; weights stay resident in VMEM.
    x = x_ref[...]                                                      # (TB, 784)
    w1 = w1_ref[...]                                                    # (784, 128)
    if USE_BF16_MATMUL:
        x = x.astype(jnp.bfloat16)
        w1 = w1.astype(jnp.bfloat16)
    h1 = jnp.dot(x, w1, preferred_element_type=jnp.float32)            # (TB, 128)
    h1 = jnp.maximum(h1 + b1_ref[...], 0.0)
    h2 = jnp.dot(h1, w2_ref[...], preferred_element_type=jnp.float32)  # (TB, 128)
    h2 = jnp.maximum(h2 + b2_ref[...], 0.0)
    h3 = jnp.dot(h2, w3_ref[...], preferred_element_type=jnp.float32)  # (TB, 128)
    o_ref[...] = (h3 + b3_ref[...]).astype(o_ref.dtype)                # lane-dense store


@jax.jit
def mlp_forward(x, w1, b1, w2, b2, w3, b3):
    """x: (B, 1, 28, 28) or (B, 784) float32 -> logits (B, 10)."""
    x2d = x.reshape(-1, IN_DIM).astype(jnp.float32)   # same as torch .view(-1, 784)
    b = x2d.shape[0]

    # Pad batch only to a multiple of 8 (no-op for typical batches).
    b8 = _round_up(b, 8)
    if b8 != b:
        x2d = jnp.pad(x2d, ((0, b8 - b), (0, 0)))

    tile = _pick_tile(b8)
    grid = (pl.cdiv(b8, tile),)   # partial edge block (if any) is masked by Pallas

    # Weight-side padding only (tiny, exact: padded cols = 0 weight + 0 bias,
    # padded rows multiply zero activations, all sliced off at the end).
    w1f = w1.astype(jnp.float32)                                     # (784, 128)
    b1f = b1.reshape(1, H1).astype(jnp.float32)
    w2p = jnp.zeros((H1, H2_PAD), jnp.float32).at[:, :H2].set(w2)
    b2p = jnp.zeros((1, H2_PAD), jnp.float32).at[0, :H2].set(b2)
    w3p = jnp.zeros((H2_PAD, OUT_PAD), jnp.float32).at[:H2, :OUT].set(w3)
    b3p = jnp.zeros((1, OUT_PAD), jnp.float32).at[0, :OUT].set(b3)

    flops = 2 * b8 * (IN_DIM * H1 + H1 * H2_PAD + H2_PAD * OUT_PAD)
    bytes_accessed = 4 * (b8 * IN_DIM + IN_DIM * H1 + H1
                          + H1 * H2_PAD + H2_PAD
                          + H2_PAD * OUT_PAD + OUT_PAD
                          + b8 * OUT_PAD)

    out = pl.pallas_call(
        _mlp_kernel,
        out_shape=jax.ShapeDtypeStruct((b8, OUT_PAD), jnp.float32),
        grid_spec=pltpu.PrefetchScalarGridSpec(
            num_scalar_prefetch=0,
            grid=grid,
            in_specs=[
                pl.BlockSpec((tile, IN_DIM), lambda i: (i, 0)),    # x tile (streams)
                pl.BlockSpec((IN_DIM, H1), lambda i: (0, 0)),      # W1 (resident)
                pl.BlockSpec((1, H1), lambda i: (0, 0)),           # b1
                pl.BlockSpec((H1, H2_PAD), lambda i: (0, 0)),      # W2
                pl.BlockSpec((1, H2_PAD), lambda i: (0, 0)),       # b2
                pl.BlockSpec((H2_PAD, OUT_PAD), lambda i: (0, 0)), # W3
                pl.BlockSpec((1, OUT_PAD), lambda i: (0, 0)),      # b3
            ],
            out_specs=pl.BlockSpec((tile, OUT_PAD), lambda i: (i, 0)),
        ),
        compiler_params=pltpu.CompilerParams(
            dimension_semantics=("parallel",),   # batch tiles shard across v7x's 2 TCs
        ),
        cost_estimate=pl.CostEstimate(
            flops=flops, transcendentals=0, bytes_accessed=bytes_accessed),
    )(x2d, w1f, b1f, w2p, b2p, w3p, b3p)

    return out[:b, :OUT]


def init_params(key):
    """Deterministic init matching PyTorch nn.Linear default:
    U(-1/sqrt(fan_in), 1/sqrt(fan_in)) for both weight and bias."""
    ks = jax.random.split(key, 6)

    def linear(kw, kb, fan_in, fan_out):
        bound = 1.0 / jnp.sqrt(fan_in)
        w = jax.random.uniform(kw, (fan_in, fan_out), jnp.float32, -bound, bound)
        b = jax.random.uniform(kb, (fan_out,), jnp.float32, -bound, bound)
        return w, b

    w1, b1 = linear(ks[0], ks[1], IN_DIM, H1)
    w2, b2 = linear(ks[2], ks[3], H1, H2)
    w3, b3 = linear(ks[4], ks[5], H2, OUT)
    return w1, b1, w2, b2, w3, b3


def _reference(x, w1, b1, w2, b2, w3, b3):
    x2d = x.reshape(-1, IN_DIM)
    h1 = jnp.maximum(x2d @ w1 + b1, 0.0)
    h2 = jnp.maximum(h1 @ w2 + b2, 0.0)
    return h2 @ w3 + b3


if __name__ == "__main__":
    key = jax.random.PRNGKey(0)
    k_params, k_x, k_x2 = jax.random.split(key, 3)

    params = init_params(k_params)

    # Small Fashion-MNIST-like batch: (B, C, H, W) = (2, 1, 28, 28), NCHW.
    x = jax.random.normal(k_x, (2, 1, 28, 28), jnp.float32)
    out = jax.block_until_ready(mlp_forward(x, *params))
    ref = _reference(x, *params)
    assert out.shape == (2, OUT), out.shape
    assert jnp.allclose(out, ref, atol=1e-4, rtol=1e-4), "mismatch vs reference (b=2)"

    # Second check exercising a multi-step grid with a partial edge block.
    x2 = jax.random.normal(k_x2, (100, 1, 28, 28), jnp.float32)
    out2 = jax.block_until_ready(mlp_forward(x2, *params))
    ref2 = _reference(x2, *params)
    assert out2.shape == (100, OUT), out2.shape
    assert jnp.allclose(out2, ref2, atol=1e-4, rtol=1e-4), "mismatch vs reference (b=100)"

    print("KERNEL_OK")
</pallas_src>

<mosaic_0001>
module attributes {stable_mosaic.version = 11 : i64} {
  func.func @_mlp_kernel(%arg0: i32, %arg1: memref<8x784xf32, #tpu.memory_space<vmem>>, %arg2: memref<784x128xf32, #tpu.memory_space<vmem>>, %arg3: memref<1x128xf32, #tpu.memory_space<vmem>>, %arg4: memref<128x128xf32, #tpu.memory_space<vmem>>, %arg5: memref<1x128xf32, #tpu.memory_space<vmem>>, %arg6: memref<128x128xf32, #tpu.memory_space<vmem>>, %arg7: memref<1x128xf32, #tpu.memory_space<vmem>>, %arg8: memref<8x128xf32, #tpu.memory_space<vmem>>) attributes {dimension_semantics = [#tpu.dimension_semantics<parallel>], iteration_bounds = array<i64: 1>, scalar_prefetch = 0 : i64, scratch_operands = 0 : i64, tpu.core_type = #tpu.core_type<tc>, window_params = [{transform_indices = @transform_0, window_bounds = array<i64: 8, 784>}, {pipeline_mode = #tpu.pipeline_mode<synchronous>, transform_indices = @transform_1, window_bounds = array<i64: 784, 128>}, {pipeline_mode = #tpu.pipeline_mode<synchronous>, transform_indices = @transform_2, window_bounds = array<i64: 1, 128>}, {pipeline_mode = #tpu.pipeline_mode<synchronous>, transform_indices = @transform_3, window_bounds = array<i64: 128, 128>}, {pipeline_mode = #tpu.pipeline_mode<synchronous>, transform_indices = @transform_4, window_bounds = array<i64: 1, 128>}, {pipeline_mode = #tpu.pipeline_mode<synchronous>, transform_indices = @transform_5, window_bounds = array<i64: 128, 128>}, {pipeline_mode = #tpu.pipeline_mode<synchronous>, transform_indices = @transform_6, window_bounds = array<i64: 1, 128>}, {transform_indices = @transform_7, window_bounds = array<i64: 8, 128>}]} {
    %c0 = arith.constant 0 : index
    %c0_0 = arith.constant 0 : index
    %0 = vector.load %arg1[%c0, %c0_0] : memref<8x784xf32, #tpu.memory_space<vmem>>, vector<8x784xf32>
    %c0_1 = arith.constant 0 : index
    %c0_2 = arith.constant 0 : index
    %1 = vector.load %arg2[%c0_1, %c0_2] : memref<784x128xf32, #tpu.memory_space<vmem>>, vector<784x128xf32>
    %cst = arith.constant dense<0.000000e+00> : vector<8x128xf32>
    %2 = tpu.matmul %0, %1, %cst {dimension_numbers = #tpu.dot_dimension_numbers<[1], [0], [0], [1], [0, 0, 1, 1], [], []>} : vector<8x784xf32>, vector<784x128xf32>, vector<8x128xf32> -> vector<8x128xf32>
    %c0_3 = arith.constant 0 : index
    %c0_4 = arith.constant 0 : index
    %3 = vector.load %arg3[%c0_3, %c0_4] : memref<1x128xf32, #tpu.memory_space<vmem>>, vector<1x128xf32>
    %4 = vector.broadcast %3 : vector<1x128xf32> to vector<8x128xf32>
    %5 = arith.addf %2, %4 : vector<8x128xf32>
    %cst_5 = arith.constant 0.000000e+00 : f32
    %6 = vector.broadcast %cst_5 : f32 to vector<8x128xf32>
    %7 = arith.maximumf %5, %6 : vector<8x128xf32>
    %c0_6 = arith.constant 0 : index
    %c0_7 = arith.constant 0 : index
    %8 = vector.load %arg4[%c0_6, %c0_7] : memref<128x128xf32, #tpu.memory_space<vmem>>, vector<128x128xf32>
    %cst_8 = arith.constant dense<0.000000e+00> : vector<8x128xf32>
    %9 = tpu.matmul %7, %8, %cst_8 {dimension_numbers = #tpu.dot_dimension_numbers<[1], [0], [0], [1], [0, 0, 1, 1], [], []>} : vector<8x128xf32>, vector<128x128xf32>, vector<8x128xf32> -> vector<8x128xf32>
    %c0_9 = arith.constant 0 : index
    %c0_10 = arith.constant 0 : index
    %10 = vector.load %arg5[%c0_9, %c0_10] : memref<1x128xf32, #tpu.memory_space<vmem>>, vector<1x128xf32>
    %11 = vector.broadcast %10 : vector<1x128xf32> to vector<8x128xf32>
    %12 = arith.addf %9, %11 : vector<8x128xf32>
    %cst_11 = arith.constant 0.000000e+00 : f32
    %13 = vector.broadcast %cst_11 : f32 to vector<8x128xf32>
    %14 = arith.maximumf %12, %13 : vector<8x128xf32>
    %c0_12 = arith.constant 0 : index
    %c0_13 = arith.constant 0 : index
    %15 = vector.load %arg6[%c0_12, %c0_13] : memref<128x128xf32, #tpu.memory_space<vmem>>, vector<128x128xf32>
    %cst_14 = arith.constant dense<0.000000e+00> : vector<8x128xf32>
    %16 = tpu.matmul %14, %15, %cst_14 {dimension_numbers = #tpu.dot_dimension_numbers<[1], [0], [0], [1], [0, 0, 1, 1], [], []>} : vector<8x128xf32>, vector<128x128xf32>, vector<8x128xf32> -> vector<8x128xf32>
    %c0_15 = arith.constant 0 : index
    %c0_16 = arith.constant 0 : index
    %17 = vector.load %arg7[%c0_15, %c0_16] : memref<1x128xf32, #tpu.memory_space<vmem>>, vector<1x128xf32>
    %18 = vector.broadcast %17 : vector<1x128xf32> to vector<8x128xf32>
    %19 = arith.addf %16, %18 : vector<8x128xf32>
    %c0_17 = arith.constant 0 : index
    %c0_18 = arith.constant 0 : index
    %20 = vector.load %arg8[%c0_17, %c0_18] : memref<8x128xf32, #tpu.memory_space<vmem>>, vector<8x128xf32>
    tpu.vector_store %arg8[%c0_17, %c0_18], %19 {strides = array<i32>} : memref<8x128xf32, #tpu.memory_space<vmem>>, vector<8x128xf32>,
    return
  }
  func.func @transform_0(%arg0: i32) -> (i32, i32) {
    %c0_i32 = arith.constant 0 : i32
    %c0_i32_0 = arith.constant 0 : i32
    return %arg0, %c0_i32 : i32, i32
  }
  func.func @transform_1(%arg0: i32) -> (i32, i32) {
    %c0_i32 = arith.constant 0 : i32
    %c0_i32_0 = arith.constant 0 : i32
    %c0_i32_1 = arith.constant 0 : i32
    return %c0_i32, %c0_i32_0 : i32, i32
  }
  func.func @transform_2(%arg0: i32) -> (i32, i32) {
    %c0_i32 = arith.constant 0 : i32
    %c0_i32_0 = arith.constant 0 : i32
    %c0_i32_1 = arith.constant 0 : i32
    return %c0_i32, %c0_i32_0 : i32, i32
  }
  func.func @transform_3(%arg0: i32) -> (i32, i32) {
    %c0_i32 = arith.constant 0 : i32
    %c0_i32_0 = arith.constant 0 : i32
    %c0_i32_1 = arith.constant 0 : i32
    return %c0_i32, %c0_i32_0 : i32, i32
  }
  func.func @transform_4(%arg0: i32) -> (i32, i32) {
    %c0_i32 = arith.constant 0 : i32
    %c0_i32_0 = arith.constant 0 : i32
    %c0_i32_1 = arith.constant 0 : i32
    return %c0_i32, %c0_i32_0 : i32, i32
  }
  func.func @transform_5(%arg0: i32) -> (i32, i32) {
    %c0_i32 = arith.constant 0 : i32
    %c0_i32_0 = arith.constant 0 : i32
    %c0_i32_1 = arith.constant 0 : i32
    return %c0_i32, %c0_i32_0 : i32, i32
  }
  func.func @transform_6(%arg0: i32) -> (i32, i32) {
    %c0_i32 = arith.constant 0 : i32
    %c0_i32_0 = arith.constant 0 : i32
    %c0_i32_1 = arith.constant 0 : i32
    return %c0_i32, %c0_i32_0 : i32, i32
  }
  func.func @transform_7(%arg0: i32) -> (i32, i32) {
    %c0_i32 = arith.constant 0 : i32
    %c0_i32_0 = arith.constant 0 : i32
    return %arg0, %c0_i32 : i32, i32
  }
}

</mosaic_0001>

<bundles_post_ra>
// kernel: mlp_forward.1
= control target key start
LH: loop header
LB: loop body
LE: loop exit
PB: predicated region body
PF: predicated region fallthrough
CT: control target
= control target key end

     0   :  { %vm989_vm0 = vmmov 0   ;;  %vm138_vm1 = vcmask 130048   ;;  %s1474_s1 = inlined_call_operand.vmem [shape: f32[784,128], index: 1, kind: input, shape index: {}]   ;;  %s1475_s0 = inlined_call_operand.vmem [shape: f32[8,784], index: 0, kind: input, shape index: {}]   ;;  %s1476_s3 = inlined_call_operand.vmem [shape: f32[128,128], index: 3, kind: input, shape index: {}]   ;;  %s1477_s5 = inlined_call_operand.vmem [shape: f32[128,128], index: 5, kind: input, shape index: {}]   ;;  %s1478_s2 = inlined_call_operand.vmem [shape: f32[1,128], index: 2, kind: input, shape index: {}]   ;;  %s1479_s4 = inlined_call_operand.vmem [shape: f32[1,128], index: 4, kind: input, shape index: {}]   ;;  %s1480_s6 = inlined_call_operand.vmem [shape: f32[1,128], index: 6, kind: input, shape index: {}]   ;;  %s1481_s7 = inlined_call_operand.vmem [shape: f32[8,128], index: 7, kind: output, shape index: {}]  }
   0x1   :  { %v49_v0 = vld [vmem:[%s1474_s1 + $0x80] sm:$0xff]  ;;  %v50_v1 = vld [vmem:[%s1474_s1 + $0x88] sm:$0xff]  ;;  %v51_v11 = vld [vmem:[%s1474_s1 + $0x90] sm:$0xff] }
   0x2   :  { %v33_v2 = vld [vmem:[%s1474_s1] sm:$0xff]  ;;  %v838_v3 = vpack.c.bf16 %v50_v1, %v49_v0  ;;  %v34_v4 = vld [vmem:[%s1474_s1 + $0x8] sm:$0xff]  ;;  %v52_v13 = vld [vmem:[%s1474_s1 + $0x98] sm:$0xff] }
   0x3   :  { %v81_v5 = vld [vmem:[%s1474_s1 + $0x180] sm:$0xff]  ;;  %v82_v6 = vld [vmem:[%s1474_s1 + $0x188] sm:$0xff]  ;;  %v840_v7 = vpack.c.bf16 %v34_v4, %v33_v2  ;;  %v35_v14 = vld [vmem:[%s1474_s1 + $0x10] sm:$0xff]  ;;  %v842_v16 = vpack.c.bf16 %v52_v13, %v51_v11 }
   0x4   :  { %v870_v8 = vpack.c.bf16 %v82_v6, %v81_v5  ;;  %v65_v9 = vld [vmem:[%s1474_s1 + $0x100] sm:$0xff]  ;;  %v66_v10 = vld [vmem:[%s1474_s1 + $0x108] sm:$0xff]  ;;  %839 = vmatprep.subr.bf16.mxu0 %v838_v3  ;;  %v36_v15 = vld [vmem:[%s1474_s1 + $0x18] sm:$0xff] }
   0x5   :  { %v872_v12 = vpack.c.bf16 %v66_v10, %v65_v9  ;;  %841 = vmatpush3.bf16.msra.mxu0 %v840_v7  ;;  %v844_v17 = vpack.c.bf16 %v36_v15, %v35_v14  ;;  %v83_v18 = vld [vmem:[%s1474_s1 + $0x190] sm:$0xff]  ;;  %v84_v19 = vld [vmem:[%s1474_s1 + $0x198] sm:$0xff]  ;;  %v53_v23 = vld [vmem:[%s1474_s1 + $0xa0] sm:$0xff] }
   0x6   :  { %871 = vmatprep.subr.bf16.mxu1 %v870_v8  ;;  %v67_v20 = vld [vmem:[%s1474_s1 + $0x110] sm:$0xff]  ;;  %v874_v21 = vpack.c.bf16 %v84_v19, %v83_v18  ;;  %v68_v22 = vld [vmem:[%s1474_s1 + $0x118] sm:$0xff]  ;;  %v54_v24 = vld [vmem:[%s1474_s1 + $0xa8] sm:$0xff]  ;;  %843 = vmatprep.subr.bf16.mxu0 %v842_v16 }
   0x7   :  { %873 = vmatpush3.bf16.msra.mxu1 %v872_v12  ;;  %v876_v25 = vpack.c.bf16 %v68_v22, %v67_v20  ;;  %v846_v26 = vpack.c.bf16 %v54_v24, %v53_v23  ;;  %v37_v27 = vld [vmem:[%s1474_s1 + $0x20] sm:$0xff]  ;;  %v38_v28 = vld [vmem:[%s1474_s1 + $0x28] sm:$0xff]  ;;  %v55_v35 = vld [vmem:[%s1474_s1 + $0xb0] sm:$0xff] }
   0x8   :  { %v85_v29 = vld [vmem:[%s1474_s1 + $0x1a0] sm:$0xff]  ;;  %875 = vmatprep.subr.bf16.mxu1 %v874_v21  ;;  %v86_v30 = vld [vmem:[%s1474_s1 + $0x1a8] sm:$0xff]  ;;  %v848_v33 = vpack.c.bf16 %v38_v28, %v37_v27  ;;  %v56_v36 = vld [vmem:[%s1474_s1 + $0xb8] sm:$0xff] }
   0x9   :  { %v69_v31 = vld [vmem:[%s1474_s1 + $0x120] sm:$0xff]  ;;  %v70_v32 = vld [vmem:[%s1474_s1 + $0x128] sm:$0xff]  ;;  %845 = vmatpush3.bf16.msra.mxu0 %v844_v17  ;;  %v878_v34 = vpack.c.bf16 %v86_v30, %v85_v29  ;;  %v39_v37 = vld [vmem:[%s1474_s1 + $0x30] sm:$0xff]  ;;  %v850_v39 = vpack.c.bf16 %v56_v36, %v55_v35 }
   0xa   :  { %847 = vmatprep.subr.bf16.mxu0 %v846_v26  ;;  %v880_v38 = vpack.c.bf16 %v70_v32, %v69_v31  ;;  %v40_v40 = vld [vmem:[%s1474_s1 + $0x38] sm:$0xff]  ;;  %v87_v41 = vld [vmem:[%s1474_s1 + $0x1b0] sm:$0xff]  ;;  %v57_v46 = vld [vmem:[%s1474_s1 + $0xc0] sm:$0xff] }
   0xb   :  { %877 = vmatpush3.bf16.msra.mxu1 %v876_v25  ;;  %v88_v42 = vld [vmem:[%s1474_s1 + $0x1b8] sm:$0xff]  ;;  %v71_v44 = vld [vmem:[%s1474_s1 + $0x130] sm:$0xff]  ;;  %v58_v47 = vld [vmem:[%s1474_s1 + $0xc8] sm:$0xff]  ;;  %v852_v48 = vpack.c.bf16 %v40_v40, %v39_v37 }
   0xc   :  { %879 = vmatprep.subr.bf16.mxu1 %v878_v34  ;;  %v882_v43 = vpack.c.bf16 %v88_v42, %v87_v41  ;;  %v72_v45 = vld [vmem:[%s1474_s1 + $0x138] sm:$0xff]  ;;  %v89_v49 = vld [vmem:[%s1474_s1 + $0x1c0] sm:$0xff]  ;;  %v90_v50 = vld [vmem:[%s1474_s1 + $0x1c8] sm:$0xff]  ;;  %v854_v52 = vpack.c.bf16 %v58_v47, %v57_v46 }
   0xd   :  { %849 = vmatpush3.bf16.msra.mxu0 %v848_v33  ;;  %v884_v51 = vpack.c.bf16 %v72_v45, %v71_v44  ;;  %v41_v53 = vld [vmem:[%s1474_s1 + $0x40] sm:$0xff]  ;;  %v42_v54 = vld [vmem:[%s1474_s1 + $0x48] sm:$0xff]  ;;  %v886_v56 = vpack.c.bf16 %v90_v50, %v89_v49  ;;  %v59_v58 = vld [vmem:[%s1474_s1 + $0xd0] sm:$0xff]  ;;  %v988_v50 = vmov 0.0|0.0  }
   0xe   :  { %851 = vmatprep.subr.bf16.mxu0 %v850_v39  ;;  %v73_v55 = vld [vmem:[%s1474_s1 + $0x140] sm:$0xff]  ;;  %v74_v57 = vld [vmem:[%s1474_s1 + $0x148] sm:$0xff]  ;;  %v60_v59 = vld [vmem:[%s1474_s1 + $0xd8] sm:$0xff]  ;;  %v856_v62 = vpack.c.bf16 %v42_v54, %v41_v53 }
   0xf   :  { %881 = vmatpush3.bf16.msra.mxu1 %v880_v38  ;;  %v91_v60 = vld [vmem:[%s1474_s1 + $0x1d0] sm:$0xff]  ;;  %v92_v61 = vld [vmem:[%s1474_s1 + $0x1d8] sm:$0xff]  ;;  %v888_v63 = vpack.c.bf16 %v74_v57, %v73_v55  ;;  %v858_v0 = vpack.c.bf16 %v60_v59, %v59_v58  ;;  %v61_v6 = vld [vmem:[%s1474_s1 + $0xe0] sm:$0xff] }
  0x10   :  { %883 = vmatprep.subr.bf16.mxu1 %v882_v43  ;;  %v43_v1 = vld [vmem:[%s1474_s1 + $0x50] sm:$0xff]  ;;  %v44_v2 = vld [vmem:[%s1474_s1 + $0x58] sm:$0xff]  ;;  %v890_v4 = vpack.c.bf16 %v92_v61, %v91_v60  ;;  %v62_v7 = vld [vmem:[%s1474_s1 + $0xe8] sm:$0xff]  ;;  %v990_v60 = vmov 0.0  }
  0x11   :  { %853 = vmatpush3.bf16.msra.mxu0 %v852_v48  ;;  %v75_v3 = vld [vmem:[%s1474_s1 + $0x150] sm:$0xff]  ;;  %v76_v5 = vld [vmem:[%s1474_s1 + $0x158] sm:$0xff]  ;;  %v93_v8 = vld [vmem:[%s1474_s1 + $0x1e0] sm:$0xff]  ;;  %v860_v10 = vpack.c.bf16 %v44_v2, %v43_v1  ;;  %v862_v14 = vpack.c.bf16 %v62_v7, %v61_v6 }
  0x12   :  { %855 = vmatprep.subr.bf16.mxu0 %v854_v52  ;;  %v94_v9 = vld [vmem:[%s1474_s1 + $0x1e8] sm:$0xff]  ;;  %v45_v11 = vld [vmem:[%s1474_s1 + $0x60] sm:$0xff]  ;;  %v892_v13 = vpack.c.bf16 %v76_v5, %v75_v3  ;;  %v63_v19 = vld [vmem:[%s1474_s1 + $0xf0] sm:$0xff] }
  0x13   :  { %885 = vmatpush3.bf16.msra.mxu1 %v884_v51  ;;  %v27_v12 = vld [vmem:[%s1475_s0 + $0x8] sm:$0xff]  ;;  %v77_v16 = vld [vmem:[%s1474_s1 + $0x160] sm:$0xff]  ;;  %v894_v18 = vpack.c.bf16 %v94_v9, %v93_v8  ;;  %v64_v20 = vld [vmem:[%s1474_s1 + $0xf8] sm:$0xff] }
  0x14   :  { %887 = vmatprep.subr.bf16.mxu1 %v886_v56  ;;  %v46_v15 = vld [vmem:[%s1474_s1 + $0x68] sm:$0xff]  ;;  %206 = vmatprep.mubr.f32.mxu0 %v27_v12  ;;  %v29_v21 = vld [vmem:[%s1475_s0 + $0x18] sm:$0xff]  ;;  %v95_v22 = vld [vmem:[%s1474_s1 + $0x1f0] sm:$0xff]  ;;  %v866_v26 = vpack.c.bf16 %v64_v20, %v63_v19 }
  0x15   :  { %857 = vmatpush3.bf16.msra.mxu0 %v856_v62  ;;  %v78_v17 = vld [vmem:[%s1474_s1 + $0x168] sm:$0xff]  ;;  %v96_v23 = vld [vmem:[%s1474_s1 + $0x1f8] sm:$0xff]  ;;  %276 = vmatprep.mubr.f32.mxu1 %v29_v21  ;;  %v864_v24 = vpack.c.bf16 %v46_v15, %v45_v11  ;;  %v47_v27 = vld [vmem:[%s1474_s1 + $0x70] sm:$0xff] }
  0x16   :  { %859 = vmatprep.subr.bf16.mxu0 %v858_v0  ;;  %v896_v25 = vpack.c.bf16 %v78_v17, %v77_v16  ;;  %v48_v28 = vld [vmem:[%s1474_s1 + $0x78] sm:$0xff]  ;;  %v79_v29 = vld [vmem:[%s1474_s1 + $0x170] sm:$0xff]  ;;  %v898_v30 = vpack.c.bf16 %v96_v23, %v95_v22  ;;  %v113_v32 = vld [vmem:[%s1474_s1 + $0x280] sm:$0xff] }
  0x17   :  { %889 = vmatpush3.bf16.msra.mxu1 %v888_v63  ;;  %v80_v31 = vld [vmem:[%s1474_s1 + $0x178] sm:$0xff]  ;;  %v114_v33 = vld [vmem:[%s1474_s1 + $0x288] sm:$0xff]  ;;  %v868_v34 = vpack.c.bf16 %v48_v28, %v47_v27  ;;  %v97_v37 = vld [vmem:[%s1474_s1 + $0x200] sm:$0xff] }
  0x18   :  { %891 = vmatprep.subr.bf16.mxu1 %v890_v4  ;;  %v900_v35 = vpack.c.bf16 %v80_v31, %v79_v29  ;;  %v902_v36 = vpack.c.bf16 %v114_v33, %v113_v32  ;;  %v98_v38 = vld [vmem:[%s1474_s1 + $0x208] sm:$0xff]  ;;  %v115_v39 = vld [vmem:[%s1474_s1 + $0x290] sm:$0xff]  ;;  %v116_v40 = vld [vmem:[%s1474_s1 + $0x298] sm:$0xff] }
  0x19   :  { %861 = vmatpush3.bf16.msra.mxu0 %v860_v10  ;;  %v26_v41 = vld [vmem:[%s1475_s0] sm:$0xff]  ;;  %v904_v42 = vpack.c.bf16 %v98_v38, %v97_v37  ;;  %v28_v43 = vld [vmem:[%s1475_s0 + $0x10] sm:$0xff]  ;;  %v906_v45 = vpack.c.bf16 %v116_v40, %v115_v39  ;;  %v100_v46 = vld [vmem:[%s1474_s1 + $0x218] sm:$0xff] }
  0x1a   :  { %863 = vmatprep.subr.bf16.mxu0 %v862_v14  ;;  %v99_v44 = vld [vmem:[%s1474_s1 + $0x210] sm:$0xff]  ;;  %v117_v47 = vld [vmem:[%s1474_s1 + $0x2a0] sm:$0xff]  ;;  %v118_v48 = vld [vmem:[%s1474_s1 + $0x2a8] sm:$0xff] }
  0x1b   :  { %893 = vmatpush3.bf16.msra.mxu1 %v892_v13  ;;  %v31_v49 = vld [vmem:[%s1475_s0 + $0x28] sm:$0xff]  ;;  %v129_v51 = vld [vmem:[%s1474_s1 + $0x300] sm:$0xff]  ;;  %v908_v54 = vpack.c.bf16 %v100_v46, %v99_v44  ;;  %v910_v55 = vpack.c.bf16 %v118_v48, %v117_v47  ;;  %v119_v58 = vld [vmem:[%s1474_s1 + $0x2b0] sm:$0xff] }
  0x1c   :  { %895 = vmatprep.subr.bf16.mxu1 %v894_v18  ;;  %v130_v52 = vld [vmem:[%s1474_s1 + $0x308] sm:$0xff]  ;;  %v101_v56 = vld [vmem:[%s1474_s1 + $0x220] sm:$0xff]  ;;  %v120_v59 = vld [vmem:[%s1474_s1 + $0x2b8] sm:$0xff] }
  0x1d   :  { %865 = vmatpush3.bf16.msra.mxu0 %v864_v24  ;;  %v935_v53 = vpack.c.bf16 %v130_v52, %v129_v51  ;;  %v102_v57 = vld [vmem:[%s1474_s1 + $0x228] sm:$0xff]  ;;  %v32_v61 = vld [vmem:[%s1475_s0 + $0x30] sm:$0xff]  ;;  %v914_v63 = vpack.c.bf16 %v120_v59, %v119_v58  ;;  %v104_v1 = vld [vmem:[%s1474_s1 + $0x238] sm:$0xff] }
  0x1e   :  { %867 = vmatprep.subr.bf16.mxu0 %v866_v26  ;;  %v912_v62 = vpack.c.bf16 %v102_v57, %v101_v56  ;;  %v103_v0 = vld [vmem:[%s1474_s1 + $0x230] sm:$0xff]  ;;  %v121_v2 = vld [vmem:[%s1474_s1 + $0x2c0] sm:$0xff]  ;;  %v122_v3 = vld [vmem:[%s1474_s1 + $0x2c8] sm:$0xff] }
  0x1f   :  { %897 = vmatpush3.bf16.msra.mxu1 %v896_v25  ;;  %v916_v4 = vpack.c.bf16 %v104_v1, %v103_v0  ;;  %v918_v5 = vpack.c.bf16 %v122_v3, %v121_v2  ;;  %v105_v6 = vld [vmem:[%s1474_s1 + $0x240] sm:$0xff]  ;;  %v106_v7 = vld [vmem:[%s1474_s1 + $0x248] sm:$0xff]  ;;  %v123_v8 = vld [vmem:[%s1474_s1 + $0x2d0] sm:$0xff] }
  0x20   :  { %899 = vmatprep.subr.bf16.mxu1 %v898_v30  ;;  %v124_v9 = vld [vmem:[%s1474_s1 + $0x2d8] sm:$0xff]  ;;  %v920_v10 = vpack.c.bf16 %v106_v7, %v105_v6  ;;  %v107_v12 = vld [vmem:[%s1474_s1 + $0x250] sm:$0xff]  ;;  %v125_v14 = vld [vmem:[%s1474_s1 + $0x2e0] sm:$0xff] }
  0x21   :  { %869 = vmatpush3.bf16.msra.mxu0 %v868_v34  ;;  %v922_v11 = vpack.c.bf16 %v124_v9, %v123_v8  ;;  %v108_v13 = vld [vmem:[%s1474_s1 + $0x258] sm:$0xff]  ;;  %v126_v15 = vld [vmem:[%s1474_s1 + $0x2e8] sm:$0xff]  ;;  %v109_v18 = vld [vmem:[%s1474_s1 + $0x260] sm:$0xff] }
  0x22   :  { %903 = vmatprep.subr.bf16.mxu0 %v902_v36  ;;  %v924_v16 = vpack.c.bf16 %v108_v13, %v107_v12  ;;  %v926_v17 = vpack.c.bf16 %v126_v15, %v125_v14  ;;  %v110_v19 = vld [vmem:[%s1474_s1 + $0x268] sm:$0xff]  ;;  %v127_v20 = vld [vmem:[%s1474_s1 + $0x2f0] sm:$0xff]  ;;  %v128_v21 = vld [vmem:[%s1474_s1 + $0x2f8] sm:$0xff] }
  0x23   :  { %901 = vmatpush3.bf16.msra.mxu1 %v900_v35  ;;  %v928_v22 = vpack.c.bf16 %v110_v19, %v109_v18  ;;  %v930_v23 = vpack.c.bf16 %v128_v21, %v127_v20  ;;  %v111_v24 = vld [vmem:[%s1474_s1 + $0x270] sm:$0xff]  ;;  %v112_v25 = vld [vmem:[%s1474_s1 + $0x278] sm:$0xff]  ;;  %v30_v27 = vld [vmem:[%s1475_s0 + $0x20] sm:$0xff] }
  0x24   :  { %934 = vmatprep.subr.bf16.mxu1 %v988_v50  ;;  %207 = vmatmul.mubr.f32.vlgmr.msra.gmra.mrb[0].mxu0 %v26_v41  ;;  %v932_v26 = vpack.c.bf16 %v112_v25, %v111_v24  ;;  %v423_v28 = vld [vmem:[%s1476_s3] sm:$0xff]  ;;  %v424_v29 = vld [vmem:[%s1476_s3 + $0x8] sm:$0xff]  ;;  %v425_v30 = vld [vmem:[%s1476_s3 + $0x10] sm:$0xff] }
  0x25   :  { %905 = vmatpush3.bf16.msra.mxu0 %v904_v42  ;;  %346 = vmatprep.mubr.f32.mxu0 %v31_v49  ;;  %v938_v31 = vpack.c.bf16 %v424_v29, %v423_v28  ;;  %v426_v32 = vld [vmem:[%s1476_s3 + $0x18] sm:$0xff]  ;;  %v427_v34 = vld [vmem:[%s1476_s3 + $0x20] sm:$0xff]  ;;  %v428_v35 = vld [vmem:[%s1476_s3 + $0x28] sm:$0xff] }
  0x26   :  { %277 = vmatmul.mubr.f32.vlgmr.msra.gmra.mrb[0].mxu1 %v28_v43  ;;  %907 = vmatprep.subr.bf16.mxu0 %v906_v45  ;;  %v941_v33 = vpack.c.bf16 %v426_v32, %v425_v30  ;;  %v944_v36 = vpack.c.bf16 %v428_v35, %v427_v34  ;;  %v429_v37 = vld [vmem:[%s1476_s3 + $0x30] sm:$0xff]  ;;  %v430_v38 = vld [vmem:[%s1476_s3 + $0x38] sm:$0xff]  ;;  %v431_v40 = vld [vmem:[%s1476_s3 + $0x40] sm:$0xff] }
  0x27   :  { %936 = vmatpush3.bf16.msra.mxu1 %v935_v53  ;;  %765 = vmatprep.mubr.msk.f32.mxu1 %vm989_vm0, %v990_v60  ;;  %v947_v39 = vpack.c.bf16 %v430_v38, %v429_v37  ;;  %v432_v41 = vld [vmem:[%s1476_s3 + $0x48] sm:$0xff]  ;;  %v433_v43 = vld [vmem:[%s1476_s3 + $0x50] sm:$0xff]  ;;  %v434_v44 = vld [vmem:[%s1476_s3 + $0x58] sm:$0xff] }
  0x28   :  { %937 = vmatprep.subr.bf16.mxu1 %v988_v50  ;;  %v950_v42 = vpack.c.bf16 %v432_v41, %v431_v40  ;;  %v953_v45 = vpack.c.bf16 %v434_v44, %v433_v43  ;;  %v435_v46 = vld [vmem:[%s1476_s3 + $0x60] sm:$0xff]  ;;  %v436_v47 = vld [vmem:[%s1476_s3 + $0x68] sm:$0xff]  ;;  %v437_v49 = vld [vmem:[%s1476_s3 + $0x70] sm:$0xff] }
  0x29   :  { %909 = vmatpush3.bf16.msra.mxu0 %v908_v54  ;;  %v956_v48 = vpack.c.bf16 %v436_v47, %v435_v46  ;;  %v438_v51 = vld [vmem:[%s1476_s3 + $0x78] sm:$0xff]  ;;  %v517_v53 = vld [vmem:[%s1477_s5] sm:$0xff]  ;;  %v518_v54 = vld [vmem:[%s1477_s5 + $0x8] sm:$0xff] }
  0x2a   :  { %911 = vmatprep.subr.bf16.mxu0 %v910_v55  ;;  %766 = vmatmul.mubr.msk.f32.vlgmr.msra.gmra.mrb[2].mxu1 %vm138_vm1, %v32_v61  ;;  %v959_v52 = vpack.c.bf16 %v438_v51, %v437_v49  ;;  %v519_v55 = vld [vmem:[%s1477_s5 + $0x10] sm:$0xff]  ;;  %v962_v56 = vpack.c.bf16 %v518_v54, %v517_v53  ;;  %v520_v57 = vld [vmem:[%s1477_s5 + $0x18] sm:$0xff]  ;;  %v521_v59 = vld [vmem:[%s1477_s5 + $0x20] sm:$0xff] }
  0x2b   :  { %800 = vmatprep.mubr.msk.f32.mxu1 %vm989_vm0, %v990_v60  ;;  %939 = vmatpush3.bf16.msra.mxu1 %v938_v31  ;;  %v965_v58 = vpack.c.bf16 %v520_v57, %v519_v55  ;;  %v525_v1 = vld [vmem:[%s1477_s5 + $0x40] sm:$0xff]  ;;  %v526_v2 = vld [vmem:[%s1477_s5 + $0x48] sm:$0xff] }
  0x2c   :  { %940 = vmatprep.subr.bf16.mxu1 %v988_v50  ;;  %v974_v3 = vpack.c.bf16 %v526_v2, %v525_v1  ;;  %v529_v7 = vld [vmem:[%s1477_s5 + $0x60] sm:$0xff]  ;;  %v530_v8 = vld [vmem:[%s1477_s5 + $0x68] sm:$0xff] }
  0x2d   :  { %913 = vmatpush3.bf16.msra.mxu0 %v912_v62  ;;  %v523_v62 = vld [vmem:[%s1477_s5 + $0x30] sm:$0xff]  ;;  %v980_v9 = vpack.c.bf16 %v530_v8, %v529_v7  ;;  %v617_v29 = vld [vmem:[%s1479_s4] ss:$0 sm:$0xff] }
  0x2e   :  { %915 = vmatprep.subr.bf16.mxu0 %v914_v63  ;;  %v524_v63 = vld [vmem:[%s1477_s5 + $0x38] sm:$0xff]  ;;  %v618_v34 = vld [vmem:[%s1480_s6] ss:$0 sm:$0xff] }
  0x2f   :  { %942 = vmatpush3.bf16.msra.mxu1 %v941_v33  ;;  %v971_v0 = vpack.c.bf16 %v524_v63, %v523_v62 }
  0x30   :  { %943 = vmatprep.subr.bf16.mxu1 %v988_v50 }
  0x31   :  { %917 = vmatpush3.bf16.msra.mxu0 %v916_v4  ;;  %v527_v4 = vld [vmem:[%s1477_s5 + $0x50] sm:$0xff] }
  0x32   :  { %919 = vmatprep.subr.bf16.mxu0 %v918_v5  ;;  %v528_v5 = vld [vmem:[%s1477_s5 + $0x58] sm:$0xff] }
  0x33   :  { %945 = vmatpush3.bf16.msra.mxu1 %v944_v36  ;;  %v977_v6 = vpack.c.bf16 %v528_v5, %v527_v4 }
  0x34   :  { %946 = vmatprep.subr.bf16.mxu1 %v988_v50 }
  0x35   :  { %921 = vmatpush3.bf16.msra.mxu0 %v920_v10 }
  0x36   :  { %923 = vmatprep.subr.bf16.mxu0 %v922_v11  ;;  %v615_v11 = vld [vmem:[%s1478_s2] ss:$0 sm:$0xff] }
  0x37   :  { %948 = vmatpush3.bf16.msra.mxu1 %v947_v39 }
  0x38   :  { %949 = vmatprep.subr.bf16.mxu1 %v988_v50 }
  0x39   :  { %925 = vmatpush3.bf16.msra.mxu0 %v924_v16 }
  0x3a   :  { %927 = vmatprep.subr.bf16.mxu0 %v926_v17 }
  0x3b   :  { %951 = vmatpush3.bf16.msra.mxu1 %v950_v42 }
  0x3c   :  { %952 = vmatprep.subr.bf16.mxu1 %v988_v50 }
  0x3d   :  { %929 = vmatpush3.bf16.msra.mxu0 %v928_v22 }
  0x3e   :  { %931 = vmatprep.subr.bf16.mxu0 %v930_v23 }
  0x3f   :  { %954 = vmatpush3.bf16.msra.mxu1 %v953_v45 }
  0x40   :  { %955 = vmatprep.subr.bf16.mxu1 %v988_v50 }
  0x41   :  { %933 = vmatpush3.bf16.msra.mxu0 %v932_v26  ;;  %v531_v26 = vld [vmem:[%s1477_s5 + $0x70] sm:$0xff] }
  0x42   :  { %961 = vmatprep.subr.bf16.mxu0 %v988_v50 }
  0x43   :  { %957 = vmatpush3.bf16.msra.mxu1 %v956_v48 }
  0x44   :  { %347 = vmatmul.mubr.f32.vlgmr.msra.gmra.mrb[2].mxu0 %v30_v27  ;;  %958 = vmatprep.subr.bf16.mxu1 %v988_v50  ;;  %v532_v27 = vld [vmem:[%s1477_s5 + $0x78] sm:$0xff] }
  0x45   :  { %835 = vmatprep.mubr.msk.f32.mxu0 %vm989_vm0, %v990_v60  ;;  %963 = vmatpush3.bf16.msra.mxu0 %v962_v56  ;;  %v522_v60 = vld [vmem:[%s1477_s5 + $0x28] sm:$0xff]  ;;  %v983_v28 = vpack.c.bf16 %v532_v27, %v531_v26 }
  0x46   :  { %964 = vmatprep.subr.bf16.mxu0 %v988_v50  ;;  %v968_v61 = vpack.c.bf16 %v522_v60, %v521_v59 }
  0x47   :  { %960 = vmatpush3.bf16.msra.mxu1 %v959_v52 }
  0x49   :  { %966 = vmatpush3.bf16.msra.mxu0 %v965_v58 }
  0x4a   :  { %967 = vmatprep.subr.bf16.mxu0 %v988_v50 }
  0x4d   :  { %969 = vmatpush3.bf16.msra.mxu0 %v968_v61 }
  0x4e   :  { %970 = vmatprep.subr.bf16.mxu0 %v988_v50 }
  0x51   :  { %972 = vmatpush3.bf16.msra.mxu0 %v971_v0 }
  0x52   :  { %973 = vmatprep.subr.bf16.mxu0 %v988_v50 }
  0x55   :  { %975 = vmatpush3.bf16.msra.mxu0 %v974_v3 }
  0x56   :  { %976 = vmatprep.subr.bf16.mxu0 %v988_v50 }
  0x59   :  { %978 = vmatpush3.bf16.msra.mxu0 %v977_v6 }
  0x5a   :  { %979 = vmatprep.subr.bf16.mxu0 %v988_v50 }
  0x5d   :  { %981 = vmatpush3.bf16.msra.mxu0 %v980_v9 }
  0x5e   :  { %982 = vmatprep.subr.bf16.mxu0 %v988_v50 }
  0x61   :  { %984 = vmatpush3.bf16.msra.mxu0 %v983_v28 }
  0xf7   :  { %v651_v10 = vpop.f32.mrb[0].mxu0 }
  0xf8   :  { %v652_v12 = vpop.f32.mrb[1].mxu0 }
  0xf9   :  { %v686_v13 = vpop.f32.mrb[0].mxu1  ;;  %v653_v14 = vadd.f32 %v652_v12, %v651_v10 }
  0xfa   :  { %v687_v15 = vpop.f32.mrb[1].mxu1 }
  0xfb   :  { %v688_v16 = vadd.f32 %v687_v15, %v686_v13  ;;  %v209_v17 = vadd.f32 %v653_v14, %v615_v11 }
  0xfd   :  { %v279_v18 = vadd.f32 %v688_v16, %v209_v17  ;;  %v418_v19 = vpop.f32.mrb[2].mxu1 }
  0xfe   :  { %v767_v20 = vpop.f32.mrb[3].mxu1 }
 0x117   :  { %v721_v21 = vpop.f32.mrb[2].mxu0 }
 0x118   :  { %v722_v22 = vpop.f32.mrb[3].mxu0 }
 0x119   :  { %v723_v23 = vadd.f32 %v722_v22, %v721_v21 }
 0x11b   :  { %v349_v24 = vadd.f32 %v723_v23, %v279_v18 }
 0x11d   :  { %v419_v25 = vadd.f32 %v418_v19, %v349_v24 }
 0x11f   :  { %v422_v50 = vmax.f32 %v419_v25, 0.0 }
 0x121   :  { %801 = vmatmul.mubr.f32.vlgmr.msra.gmra.mrb[4].mxu1 %v422_v50 }
 0x1f4   :  { %v512_v30 = vpop.f32.mrb[4].mxu1 }
 0x1f5   :  { %v513_v31 = vadd.f32 %v617_v29, %v512_v30  ;;  %v802_v32 = vpop.f32.mrb[5].mxu1 }
 0x1f7   :  { %v516_v33 = vmax.f32 %v513_v31, 0.0 }
 0x1f9   :  { %836 = vmatmul.mubr.f32.vlgmr.msra.gmra.mrb[4].mxu0 %v516_v33 }
 0x2cc   :  { %v606_v35 = vpop.f32.mrb[4].mxu0 }
 0x2cd   :  { %v607_v36 = vadd.f32 %v618_v34, %v606_v35  ;;  %v837_v37 = vpop.f32.mrb[5].mxu0 }
 0x2cf   :  { %610 = vst [vmem:[%s1481_s7] sm:$0xff] %v607_v36 }

</bundles_post_ra>
